<compile_context>
chip_gen: v7x
topology: tpu7x:2x2x1
jax: 0.10.0
libtpu: 0.0.40
codegen_flags: <defaults>
</compile_context>

<pallas_src>
import math

import jax
import jax.numpy as jnp
from jax.experimental import pallas as pl
from jax.experimental.pallas import tpu as pltpu

# ----------------------------- configuration -------------------------------
B = 2            # batch
T = 8            # sequence length (queries == keys == values here)
D_Q = 32         # query_size
D_K = 32         # key_size
D_V = 32         # value_size
H = 32           # num_hiddens
NUM_HEADS = 4
HEAD_DIM = H // NUM_HEADS
NEG_BIG = -1e30  # finite "masked" bias (avoids exp(-inf - -inf) NaN)


# ------------------------------- kernel ------------------------------------
def mha_kernel(q_ref, k_ref, v_ref, vl_ref,          # activations + (B,1) valid_lens
               wq_ref, wk_ref, wv_ref, wo_ref,       # full weights in VMEM
               o_ref):                               # (B, T, H) output
    # --- fused input projections over the whole batch (B*T rows, one MXU push each)
    qf = q_ref[...].reshape(B * T, D_Q).astype(jnp.float32)
    kf = k_ref[...].reshape(B * T, D_K).astype(jnp.float32)
    vf = v_ref[...].reshape(B * T, D_V).astype(jnp.float32)

    scale = 1.0 / math.sqrt(HEAD_DIM)
    qp = jnp.dot(qf, wq_ref[...], preferred_element_type=jnp.float32) * scale
    kp = jnp.dot(kf, wk_ref[...], preferred_element_type=jnp.float32)
    vp = jnp.dot(vf, wv_ref[...], preferred_element_type=jnp.float32)

    qp = qp.reshape(B, T, H)
    kp = kp.reshape(B, T, H)
    vp = vp.reshape(B, T, H)

    # --- additive key-position mask, built once for all heads ---------------
    vl = vl_ref[...]                                               # (B, 1) int32
    col = jax.lax.broadcasted_iota(jnp.int32, (B, T, T), 2)        # key index
    mask = col < vl[:, :, None]                                    # (B, T, T)
    bias = jnp.where(mask, 0.0, NEG_BIG).astype(jnp.float32)

    # --- per-head scaled-dot-product attention, batched over B --------------
    ctxs = []
    for h in range(NUM_HEADS):                       # static, tiny head count
        sl = slice(h * HEAD_DIM, (h + 1) * HEAD_DIM)
        qh = qp[:, :, sl]                            # (B, T, hd)
        kh = kp[:, :, sl]
        vh = vp[:, :, sl]

        s = jnp.einsum("bqd,bkd->bqk", qh, kh,
                       preferred_element_type=jnp.float32) + bias  # (B, T, T)
        m = jnp.max(s, axis=-1, keepdims=True)
        p = jnp.exp(s - m)
        denom = jnp.sum(p, axis=-1, keepdims=True)
        p = p * pl.reciprocal(denom, approx=True)                  # EUP, not VPU divide

        ctxs.append(jnp.einsum("bqk,bkd->bqd", p, vh,
                               preferred_element_type=jnp.float32))  # (B, T, hd)

    # --- concat heads, single output projection ------------------------------
    ctx = jnp.concatenate(ctxs, axis=-1).reshape(B * T, H)          # (B*T, H)
    out = jnp.dot(ctx, wo_ref[...], preferred_element_type=jnp.float32)
    o_ref[...] = out.reshape(B, T, H).astype(o_ref.dtype)


# ------------------------------- wrapper ------------------------------------
def multi_head_attention(q, k, v, valid_lens, wq, wk, wv, wo):
    vl2d = valid_lens.reshape(B, 1).astype(jnp.int32)
    vmem = lambda: pl.BlockSpec(memory_space=pltpu.MemorySpace.VMEM)
    # Single invocation (no grid): whole (tiny) arrays live in VMEM; this
    # removes the per-grid-step pipeline overhead that dominated at this size.
    return pl.pallas_call(
        mha_kernel,
        out_shape=jax.ShapeDtypeStruct((B, T, H), jnp.float32),
        in_specs=[vmem() for _ in range(8)],
        out_specs=vmem(),
    )(q, k, v, vl2d, wq, wk, wv, wo)


# --------------------------- pure-JAX reference ------------------------------
def reference(q, k, v, valid_lens, wq, wk, wv, wo):
    def to_heads(x):  # (B, T, H) -> (B*nh, T, hd)
        x = x.reshape(B, T, NUM_HEADS, HEAD_DIM).transpose(0, 2, 1, 3)
        return x.reshape(B * NUM_HEADS, T, HEAD_DIM)

    qh, kh, vh = to_heads(q @ wq), to_heads(k @ wk), to_heads(v @ wv)
    s = jnp.einsum("bqd,bkd->bqk", qh, kh) / math.sqrt(HEAD_DIM)
    vl = jnp.repeat(valid_lens, NUM_HEADS)
    mask = jnp.arange(T)[None, None, :] < vl[:, None, None]
    s = jnp.where(mask, s, -jnp.inf)
    p = jax.nn.softmax(s, axis=-1)
    ctx = jnp.einsum("bqk,bkd->bqd", p, vh)
    ctx = ctx.reshape(B, NUM_HEADS, T, HEAD_DIM).transpose(0, 2, 1, 3).reshape(B, T, H)
    return ctx @ wo


# --------------------------------- main --------------------------------------
if __name__ == "__main__":
    key = jax.random.PRNGKey(0)
    kq, kk, kv, kwq, kwk, kwv, kwo = jax.random.split(key, 7)

    q = jax.random.normal(kq, (B, T, D_Q), dtype=jnp.float32)
    k = jax.random.normal(kk, (B, T, D_K), dtype=jnp.float32)
    v = jax.random.normal(kv, (B, T, D_V), dtype=jnp.float32)

    # deterministic Linear weights (bias=False), stored (in_features, out_features)
    wq = jax.random.normal(kwq, (D_Q, H), dtype=jnp.float32) * 0.1
    wk = jax.random.normal(kwk, (D_K, H), dtype=jnp.float32) * 0.1
    wv = jax.random.normal(kwv, (D_V, H), dtype=jnp.float32) * 0.1
    wo = jax.random.normal(kwo, (H, H), dtype=jnp.float32) * 0.1

    valid_lens = jnp.array([5, 8], dtype=jnp.int32)

    out = multi_head_attention(q, k, v, valid_lens, wq, wk, wv, wo)
    out = jax.block_until_ready(out)

    ref = reference(q, k, v, valid_lens, wq, wk, wv, wo)
    assert out.shape == (B, T, H)
    # tolerance covers the EUP approximate-reciprocal softmax normalization
    assert jnp.allclose(out, ref, rtol=2e-3, atol=2e-3), (
        f"max abs err = {jnp.max(jnp.abs(out - ref))}")

    print("KERNEL_OK")
</pallas_src>

<mosaic_0001>
module attributes {stable_mosaic.version = 11 : i64} {
  func.func @mha_kernel(%arg0: memref<2x8x32xf32, #tpu.memory_space<vmem>>, %arg1: memref<2x8x32xf32, #tpu.memory_space<vmem>>, %arg2: memref<2x8x32xf32, #tpu.memory_space<vmem>>, %arg3: memref<2x1xi32, #tpu.memory_space<vmem>>, %arg4: memref<32x32xf32, #tpu.memory_space<vmem>>, %arg5: memref<32x32xf32, #tpu.memory_space<vmem>>, %arg6: memref<32x32xf32, #tpu.memory_space<vmem>>, %arg7: memref<32x32xf32, #tpu.memory_space<vmem>>, %arg8: memref<2x8x32xf32, #tpu.memory_space<vmem>>) attributes {dimension_semantics = [], scalar_prefetch = 0 : i64, scratch_operands = 0 : i64, tpu.core_type = #tpu.core_type<tc>} {
    %c0 = arith.constant 0 : index
    %c0_0 = arith.constant 0 : index
    %c0_1 = arith.constant 0 : index
    %0 = vector.load %arg0[%c0, %c0_0, %c0_1] : memref<2x8x32xf32, #tpu.memory_space<vmem>>, vector<2x8x32xf32>
    %1 = vector.shape_cast %0 : vector<2x8x32xf32> to vector<16x32xf32>
    %c0_2 = arith.constant 0 : index
    %c0_3 = arith.constant 0 : index
    %c0_4 = arith.constant 0 : index
    %2 = vector.load %arg1[%c0_2, %c0_3, %c0_4] : memref<2x8x32xf32, #tpu.memory_space<vmem>>, vector<2x8x32xf32>
    %3 = vector.shape_cast %2 : vector<2x8x32xf32> to vector<16x32xf32>
    %c0_5 = arith.constant 0 : index
    %c0_6 = arith.constant 0 : index
    %c0_7 = arith.constant 0 : index
    %4 = vector.load %arg2[%c0_5, %c0_6, %c0_7] : memref<2x8x32xf32, #tpu.memory_space<vmem>>, vector<2x8x32xf32>
    %5 = vector.shape_cast %4 : vector<2x8x32xf32> to vector<16x32xf32>
    %c0_8 = arith.constant 0 : index
    %c0_9 = arith.constant 0 : index
    %6 = vector.load %arg4[%c0_8, %c0_9] : memref<32x32xf32, #tpu.memory_space<vmem>>, vector<32x32xf32>
    %cst = arith.constant dense<0.000000e+00> : vector<16x32xf32>
    %7 = tpu.matmul %1, %6, %cst {dimension_numbers = #tpu.dot_dimension_numbers<[1], [0], [0], [1], [0, 0, 1, 1], [], []>} : vector<16x32xf32>, vector<32x32xf32>, vector<16x32xf32> -> vector<16x32xf32>
    %cst_10 = arith.constant 0.353553385 : f32
    %8 = vector.broadcast %cst_10 : f32 to vector<16x32xf32>
    %9 = arith.mulf %7, %8 : vector<16x32xf32>
    %c0_11 = arith.constant 0 : index
    %c0_12 = arith.constant 0 : index
    %10 = vector.load %arg5[%c0_11, %c0_12] : memref<32x32xf32, #tpu.memory_space<vmem>>, vector<32x32xf32>
    %cst_13 = arith.constant dense<0.000000e+00> : vector<16x32xf32>
    %11 = tpu.matmul %3, %10, %cst_13 {dimension_numbers = #tpu.dot_dimension_numbers<[1], [0], [0], [1], [0, 0, 1, 1], [], []>} : vector<16x32xf32>, vector<32x32xf32>, vector<16x32xf32> -> vector<16x32xf32>
    %c0_14 = arith.constant 0 : index
    %c0_15 = arith.constant 0 : index
    %12 = vector.load %arg6[%c0_14, %c0_15] : memref<32x32xf32, #tpu.memory_space<vmem>>, vector<32x32xf32>
    %cst_16 = arith.constant dense<0.000000e+00> : vector<16x32xf32>
    %13 = tpu.matmul %5, %12, %cst_16 {dimension_numbers = #tpu.dot_dimension_numbers<[1], [0], [0], [1], [0, 0, 1, 1], [], []>} : vector<16x32xf32>, vector<32x32xf32>, vector<16x32xf32> -> vector<16x32xf32>
    %14 = vector.shape_cast %9 : vector<16x32xf32> to vector<2x8x32xf32>
    %15 = vector.shape_cast %11 : vector<16x32xf32> to vector<2x8x32xf32>
    %16 = vector.shape_cast %13 : vector<16x32xf32> to vector<2x8x32xf32>
    %c0_17 = arith.constant 0 : index
    %c0_18 = arith.constant 0 : index
    %17 = vector.load %arg3[%c0_17, %c0_18] : memref<2x1xi32, #tpu.memory_space<vmem>>, vector<2x1xi32>
    %18 = tpu.iota {dimensions = array<i32: 2>} : vector<2x8x8xi32>
    %19 = vector.shape_cast %17 : vector<2x1xi32> to vector<2x1x1xi32>
    %20 = vector.broadcast %19 : vector<2x1x1xi32> to vector<2x8x8xi32>
    %21 = arith.cmpi slt, %18, %20 : vector<2x8x8xi32>
    %cst_19 = arith.constant 0.000000e+00 : f32
    %cst_20 = arith.constant -1.000000e+30 : f32
    %22 = vector.broadcast %cst_19 : f32 to vector<2x8x8xf32>
    %23 = vector.broadcast %cst_20 : f32 to vector<2x8x8xf32>
    %24 = arith.select %21, %22, %23 : vector<2x8x8xi1>, vector<2x8x8xf32>
    %25 = vector.extract_strided_slice %14 {offsets = [0, 0, 0], sizes = [2, 8, 8], strides = [1, 1, 1]} : vector<2x8x32xf32> to vector<2x8x8xf32>
    %26 = vector.extract_strided_slice %15 {offsets = [0, 0, 0], sizes = [2, 8, 8], strides = [1, 1, 1]} : vector<2x8x32xf32> to vector<2x8x8xf32>
    %27 = vector.extract_strided_slice %16 {offsets = [0, 0, 0], sizes = [2, 8, 8], strides = [1, 1, 1]} : vector<2x8x32xf32> to vector<2x8x8xf32>
    "tpu.trace_start"() <{level = 10 : i32, message = "bqd,bkd->bqk"}> : () -> ()
    %cst_21 = arith.constant dense<0.000000e+00> : vector<2x8x8xf32>
    %28 = tpu.matmul %25, %26, %cst_21 {dimension_numbers = #tpu.dot_dimension_numbers<[2], [2], [1], [1], [0, 0, 0, 1, 1, 1], [0], [0]>} : vector<2x8x8xf32>, vector<2x8x8xf32>, vector<2x8x8xf32> -> vector<2x8x8xf32>
    "tpu.trace_stop"() : () -> ()
    %29 = arith.addf %28, %24 : vector<2x8x8xf32>
    %cst_22 = arith.constant dense<0xFF800000> : vector<2x8xf32>
    %30 = vector.multi_reduction <maximumf>, %29, %cst_22 [2] : vector<2x8x8xf32> to vector<2x8xf32>
    %31 = vector.shape_cast %30 : vector<2x8xf32> to vector<2x8x1xf32>
    %32 = vector.broadcast %31 : vector<2x8x1xf32> to vector<2x8x8xf32>
    %33 = arith.subf %29, %32 : vector<2x8x8xf32>
    %34 = math.exp %33 : vector<2x8x8xf32>
    %cst_23 = arith.constant dense<0.000000e+00> : vector<2x8xf32>
    %35 = vector.multi_reduction <add>, %34, %cst_23 [2] : vector<2x8x8xf32> to vector<2x8xf32>
    %36 = vector.shape_cast %35 : vector<2x8xf32> to vector<2x8x1xf32>
    %37 = tpu.reciprocal %36 {approx = true} : vector<2x8x1xf32> -> vector<2x8x1xf32>
    %38 = vector.broadcast %37 : vector<2x8x1xf32> to vector<2x8x8xf32>
    %39 = arith.mulf %34, %38 : vector<2x8x8xf32>
    "tpu.trace_start"() <{level = 10 : i32, message = "bqk,bkd->bqd"}> : () -> ()
    %cst_24 = arith.constant dense<0.000000e+00> : vector<2x8x8xf32>
    %40 = tpu.matmul %39, %27, %cst_24 {dimension_numbers = #tpu.dot_dimension_numbers<[2], [1], [1], [2], [0, 0, 0, 1, 1, 2], [0], [0]>} : vector<2x8x8xf32>, vector<2x8x8xf32>, vector<2x8x8xf32> -> vector<2x8x8xf32>
    "tpu.trace_stop"() : () -> ()
    %41 = vector.extract_strided_slice %14 {offsets = [0, 0, 8], sizes = [2, 8, 8], strides = [1, 1, 1]} : vector<2x8x32xf32> to vector<2x8x8xf32>
    %42 = vector.extract_strided_slice %15 {offsets = [0, 0, 8], sizes = [2, 8, 8], strides = [1, 1, 1]} : vector<2x8x32xf32> to vector<2x8x8xf32>
    %43 = vector.extract_strided_slice %16 {offsets = [0, 0, 8], sizes = [2, 8, 8], strides = [1, 1, 1]} : vector<2x8x32xf32> to vector<2x8x8xf32>
    "tpu.trace_start"() <{level = 10 : i32, message = "bqd,bkd->bqk"}> : () -> ()
    %cst_25 = arith.constant dense<0.000000e+00> : vector<2x8x8xf32>
    %44 = tpu.matmul %41, %42, %cst_25 {dimension_numbers = #tpu.dot_dimension_numbers<[2], [2], [1], [1], [0, 0, 0, 1, 1, 1], [0], [0]>} : vector<2x8x8xf32>, vector<2x8x8xf32>, vector<2x8x8xf32> -> vector<2x8x8xf32>
    "tpu.trace_stop"() : () -> ()
    %45 = arith.addf %44, %24 : vector<2x8x8xf32>
    %cst_26 = arith.constant dense<0xFF800000> : vector<2x8xf32>
    %46 = vector.multi_reduction <maximumf>, %45, %cst_26 [2] : vector<2x8x8xf32> to vector<2x8xf32>
    %47 = vector.shape_cast %46 : vector<2x8xf32> to vector<2x8x1xf32>
    %48 = vector.broadcast %47 : vector<2x8x1xf32> to vector<2x8x8xf32>
    %49 = arith.subf %45, %48 : vector<2x8x8xf32>
    %50 = math.exp %49 : vector<2x8x8xf32>
    %cst_27 = arith.constant dense<0.000000e+00> : vector<2x8xf32>
    %51 = vector.multi_reduction <add>, %50, %cst_27 [2] : vector<2x8x8xf32> to vector<2x8xf32>
    %52 = vector.shape_cast %51 : vector<2x8xf32> to vector<2x8x1xf32>
    %53 = tpu.reciprocal %52 {approx = true} : vector<2x8x1xf32> -> vector<2x8x1xf32>
    %54 = vector.broadcast %53 : vector<2x8x1xf32> to vector<2x8x8xf32>
    %55 = arith.mulf %50, %54 : vector<2x8x8xf32>
    "tpu.trace_start"() <{level = 10 : i32, message = "bqk,bkd->bqd"}> : () -> ()
    %cst_28 = arith.constant dense<0.000000e+00> : vector<2x8x8xf32>
    %56 = tpu.matmul %55, %43, %cst_28 {dimension_numbers = #tpu.dot_dimension_numbers<[2], [1], [1], [2], [0, 0, 0, 1, 1, 2], [0], [0]>} : vector<2x8x8xf32>, vector<2x8x8xf32>, vector<2x8x8xf32> -> vector<2x8x8xf32>
    "tpu.trace_stop"() : () -> ()
    %57 = vector.extract_strided_slice %14 {offsets = [0, 0, 16], sizes = [2, 8, 8], strides = [1, 1, 1]} : vector<2x8x32xf32> to vector<2x8x8xf32>
    %58 = vector.extract_strided_slice %15 {offsets = [0, 0, 16], sizes = [2, 8, 8], strides = [1, 1, 1]} : vector<2x8x32xf32> to vector<2x8x8xf32>
    %59 = vector.extract_strided_slice %16 {offsets = [0, 0, 16], sizes = [2, 8, 8], strides = [1, 1, 1]} : vector<2x8x32xf32> to vector<2x8x8xf32>
    "tpu.trace_start"() <{level = 10 : i32, message = "bqd,bkd->bqk"}> : () -> ()
    %cst_29 = arith.constant dense<0.000000e+00> : vector<2x8x8xf32>
    %60 = tpu.matmul %57, %58, %cst_29 {dimension_numbers = #tpu.dot_dimension_numbers<[2], [2], [1], [1], [0, 0, 0, 1, 1, 1], [0], [0]>} : vector<2x8x8xf32>, vector<2x8x8xf32>, vector<2x8x8xf32> -> vector<2x8x8xf32>
    "tpu.trace_stop"() : () -> ()
    %61 = arith.addf %60, %24 : vector<2x8x8xf32>
    %cst_30 = arith.constant dense<0xFF800000> : vector<2x8xf32>
    %62 = vector.multi_reduction <maximumf>, %61, %cst_30 [2] : vector<2x8x8xf32> to vector<2x8xf32>
    %63 = vector.shape_cast %62 : vector<2x8xf32> to vector<2x8x1xf32>
    %64 = vector.broadcast %63 : vector<2x8x1xf32> to vector<2x8x8xf32>
    %65 = arith.subf %61, %64 : vector<2x8x8xf32>
    %66 = math.exp %65 : vector<2x8x8xf32>
    %cst_31 = arith.constant dense<0.000000e+00> : vector<2x8xf32>
    %67 = vector.multi_reduction <add>, %66, %cst_31 [2] : vector<2x8x8xf32> to vector<2x8xf32>
    %68 = vector.shape_cast %67 : vector<2x8xf32> to vector<2x8x1xf32>
    %69 = tpu.reciprocal %68 {approx = true} : vector<2x8x1xf32> -> vector<2x8x1xf32>
    %70 = vector.broadcast %69 : vector<2x8x1xf32> to vector<2x8x8xf32>
    %71 = arith.mulf %66, %70 : vector<2x8x8xf32>
    "tpu.trace_start"() <{level = 10 : i32, message = "bqk,bkd->bqd"}> : () -> ()
    %cst_32 = arith.constant dense<0.000000e+00> : vector<2x8x8xf32>
    %72 = tpu.matmul %71, %59, %cst_32 {dimension_numbers = #tpu.dot_dimension_numbers<[2], [1], [1], [2], [0, 0, 0, 1, 1, 2], [0], [0]>} : vector<2x8x8xf32>, vector<2x8x8xf32>, vector<2x8x8xf32> -> vector<2x8x8xf32>
    "tpu.trace_stop"() : () -> ()
    %73 = vector.extract_strided_slice %14 {offsets = [0, 0, 24], sizes = [2, 8, 8], strides = [1, 1, 1]} : vector<2x8x32xf32> to vector<2x8x8xf32>
    %74 = vector.extract_strided_slice %15 {offsets = [0, 0, 24], sizes = [2, 8, 8], strides = [1, 1, 1]} : vector<2x8x32xf32> to vector<2x8x8xf32>
    %75 = vector.extract_strided_slice %16 {offsets = [0, 0, 24], sizes = [2, 8, 8], strides = [1, 1, 1]} : vector<2x8x32xf32> to vector<2x8x8xf32>
    "tpu.trace_start"() <{level = 10 : i32, message = "bqd,bkd->bqk"}> : () -> ()
    %cst_33 = arith.constant dense<0.000000e+00> : vector<2x8x8xf32>
    %76 = tpu.matmul %73, %74, %cst_33 {dimension_numbers = #tpu.dot_dimension_numbers<[2], [2], [1], [1], [0, 0, 0, 1, 1, 1], [0], [0]>} : vector<2x8x8xf32>, vector<2x8x8xf32>, vector<2x8x8xf32> -> vector<2x8x8xf32>
    "tpu.trace_stop"() : () -> ()
    %77 = arith.addf %76, %24 : vector<2x8x8xf32>
    %cst_34 = arith.constant dense<0xFF800000> : vector<2x8xf32>
    %78 = vector.multi_reduction <maximumf>, %77, %cst_34 [2] : vector<2x8x8xf32> to vector<2x8xf32>
    %79 = vector.shape_cast %78 : vector<2x8xf32> to vector<2x8x1xf32>
    %80 = vector.broadcast %79 : vector<2x8x1xf32> to vector<2x8x8xf32>
    %81 = arith.subf %77, %80 : vector<2x8x8xf32>
    %82 = math.exp %81 : vector<2x8x8xf32>
    %cst_35 = arith.constant dense<0.000000e+00> : vector<2x8xf32>
    %83 = vector.multi_reduction <add>, %82, %cst_35 [2] : vector<2x8x8xf32> to vector<2x8xf32>
    %84 = vector.shape_cast %83 : vector<2x8xf32> to vector<2x8x1xf32>
    %85 = tpu.reciprocal %84 {approx = true} : vector<2x8x1xf32> -> vector<2x8x1xf32>
    %86 = vector.broadcast %85 : vector<2x8x1xf32> to vector<2x8x8xf32>
    %87 = arith.mulf %82, %86 : vector<2x8x8xf32>
    "tpu.trace_start"() <{level = 10 : i32, message = "bqk,bkd->bqd"}> : () -> ()
    %cst_36 = arith.constant dense<0.000000e+00> : vector<2x8x8xf32>
    %88 = tpu.matmul %87, %75, %cst_36 {dimension_numbers = #tpu.dot_dimension_numbers<[2], [1], [1], [2], [0, 0, 0, 1, 1, 2], [0], [0]>} : vector<2x8x8xf32>, vector<2x8x8xf32>, vector<2x8x8xf32> -> vector<2x8x8xf32>
    "tpu.trace_stop"() : () -> ()
    %89 = tpu.concatenate %40, %56, %72, %88 in 2 : vector<2x8x8xf32>, vector<2x8x8xf32>, vector<2x8x8xf32>, vector<2x8x8xf32> -> vector<2x8x32xf32>
    %90 = vector.shape_cast %89 : vector<2x8x32xf32> to vector<16x32xf32>
    %c0_37 = arith.constant 0 : index
    %c0_38 = arith.constant 0 : index
    %91 = vector.load %arg7[%c0_37, %c0_38] : memref<32x32xf32, #tpu.memory_space<vmem>>, vector<32x32xf32>
    %cst_39 = arith.constant dense<0.000000e+00> : vector<16x32xf32>
    %92 = tpu.matmul %90, %91, %cst_39 {dimension_numbers = #tpu.dot_dimension_numbers<[1], [0], [0], [1], [0, 0, 1, 1], [], []>} : vector<16x32xf32>, vector<32x32xf32>, vector<16x32xf32> -> vector<16x32xf32>
    %93 = vector.shape_cast %92 : vector<16x32xf32> to vector<2x8x32xf32>
    %c0_40 = arith.constant 0 : index
    %c0_41 = arith.constant 0 : index
    %c0_42 = arith.constant 0 : index
    %94 = vector.load %arg8[%c0_40, %c0_41, %c0_42] : memref<2x8x32xf32, #tpu.memory_space<vmem>>, vector<2x8x32xf32>
    tpu.vector_store %arg8[%c0_40, %c0_41, %c0_42], %93 {strides = array<i32>} : memref<2x8x32xf32, #tpu.memory_space<vmem>>, vector<2x8x32xf32>,
    return
  }
}

</mosaic_0001>

<bundles_post_ra>
// kernel: tpu_custom_call.1
= control target key start
LH: loop header
LB: loop body
LE: loop exit
PB: predicated region body
PF: predicated region fallthrough
CT: control target
= control target key end

     0   :  { %13 = vsyncpa [#allocation3], 0  ;;  %s2757_s0 = inlined_call_operand.hbm [shape: f32[2,8,32], index: 0, kind: input, shape index: {}]   ;;  %s2758_s1 = inlined_call_operand.hbm [shape: f32[2,8,32], index: 1, kind: input, shape index: {}]   ;;  %s2759_s2 = inlined_call_operand.hbm [shape: f32[2,8,32], index: 2, kind: input, shape index: {}]   ;;  %s2760_s3 = inlined_call_operand.vmem [shape: s32[2,1], index: 3, kind: input, shape index: {}]   ;;  %s2761_s4 = inlined_call_operand.hbm [shape: f32[32,32], index: 4, kind: input, shape index: {}]   ;;  %s2762_s5 = inlined_call_operand.hbm [shape: f32[32,32], index: 5, kind: input, shape index: {}]   ;;  %s2763_s6 = inlined_call_operand.hbm [shape: f32[32,32], index: 6, kind: input, shape index: {}]   ;;  %s2764_s7 = inlined_call_operand.hbm [shape: f32[32,32], index: 7, kind: input, shape index: {}]   ;;  %s2765_s8 = inlined_call_operand.hbm [shape: f32[2,8,32], index: 8, kind: output, shape index: {}]  }
   0x1   :  { %14 = vsyncpa [#allocation6], 0 }
   0x2   :  { %15 = vsyncpa [#allocation9], 0 }
   0x3   :  { %16 = vsyncpa [#allocation12], 0 }
   0x4   :  { %17 = vsyncpa [#allocation4], 0  ;;  %s2368_s27 = smov [#allocation5]   ;;  %s2369_s29 = smov [#allocation8]  }
   0x5   :  { %s35_s28 = sshll.u32 %s2368_s27, 4  ;;  %s61_s30 = sshll.u32 %s2369_s29, 4  ;;  %s36_s28 = int_to_ptr.vmem [resolvable:$true] %s35_s28  ;;  %s2433_s30 = int_to_ptr.vmem [resolvable:$true] %s61_s30 }
   0x6   :  { %s2182_s11 = scalar_lea.hbm %s2758_s1, 256 }
   0x7   :  { %p2183_p0 = scmp.ne.s32.totalorder %s2758_s1, %s2182_s11  ;;  %p2186_p1 = scmp.lt.u32.totalorder %s2182_s11, %s2758_s1 }
   0x9   :  { %p2188_p2 = pnand %p2186_p1, %p2183_p0 }
   0xb   :  { %2191 = shalt.err (!%p2188_p2)
}
   0xc   :  { %s2192_s16 = scalar_lea.vmem %s36_s28, 256  ;;  %p2197_p4 = scmp.lt.s32.totalorder %s36_s28, %s36_s28 }
   0xd   :  { %p2193_p3 = scmp.ne.s32.totalorder %s36_s28, %s2192_s16  ;;  %p2198_p5 = scmp.lt.s32.totalorder %s2192_s16, %s2192_s16 }
   0xf   :  { %p2199_p6 = por %p2198_p5, %p2197_p4 }
  0x11   :  { %p2200_p7 = pnand %p2199_p6, %p2193_p3 }
  0x13   :  { %2203 = shalt.err (!%p2200_p7)
}
  0x14   :  { %s2370_s17 = smov 128   ;;  %s2371_s18 = smov 8  }
  0x15   :  { %41 = dma.hbm_to_vmem [thread:$0]  %s2758_s1, 256, %s36_s28, [#allocation6], %s2370_s17, %s2370_s17, %s2371_s18  }
  0x16   :  { %s2204_s23 = scalar_lea.hbm %s2761_s4, 512 }
  0x17   :  { %p2205_p8 = scmp.ne.s32.totalorder %s2761_s4, %s2204_s23  ;;  %p2208_p9 = scmp.lt.u32.totalorder %s2204_s23, %s2761_s4 }
  0x19   :  { %p2210_p10 = pnand %p2208_p9, %p2205_p8 }
  0x1b   :  { %2213 = shalt.err (!%p2210_p10)
}
  0x1c   :  { %s2214_s29 = scalar_lea.vmem %s2433_s30, 512  ;;  %p2219_p12 = scmp.lt.s32.totalorder %s2433_s30, %s2433_s30 }
  0x1d   :  { %p2215_p11 = scmp.ne.s32.totalorder %s2433_s30, %s2214_s29  ;;  %p2220_p13 = scmp.lt.s32.totalorder %s2214_s29, %s2214_s29 }
  0x1f   :  { %p2221_p0 = por %p2220_p13, %p2219_p12 }
  0x21   :  { %p2222_p1 = pnand %p2221_p0, %p2215_p11 }
  0x23   :  { %2225 = shalt.err (!%p2222_p1)
}
  0x24   :  { %67 = dma.hbm_to_vmem [thread:$0]  %s2761_s4, 512, %s2433_s30, [#allocation9], %s2370_s17, %s2370_s17, %s2371_s18  }
  0x25   :  { %s2372_s9 = smov [#allocation11]   ;;  %s2373_s11 = smov [#allocation2]  }
  0x26   :  { %s85_s10 = sshll.u32 %s2372_s9, 4  ;;  %s23_s12 = sshll.u32 %s2373_s11, 4  ;;  %s86_s10 = int_to_ptr.vmem [resolvable:$true] %s85_s10  ;;  %s2470_s12 = int_to_ptr.vmem [resolvable:$true] %s23_s12 }
  0x27   :  { %s2226_s15 = scalar_lea.hbm %s2763_s6, 512 }
  0x28   :  { %p2227_p2 = scmp.ne.s32.totalorder %s2763_s6, %s2226_s15  ;;  %p2230_p3 = scmp.lt.u32.totalorder %s2226_s15, %s2763_s6 }
  0x2a   :  { %p2232_p4 = pnand %p2230_p3, %p2227_p2 }
  0x2c   :  { %2235 = shalt.err (!%p2232_p4)
}
  0x2d   :  { %s2236_s4 = scalar_lea.vmem %s86_s10, 512  ;;  %p2241_p6 = scmp.lt.s32.totalorder %s86_s10, %s86_s10 }
  0x2e   :  { %p2237_p5 = scmp.ne.s32.totalorder %s86_s10, %s2236_s4  ;;  %p2242_p7 = scmp.lt.s32.totalorder %s2236_s4, %s2236_s4 }
  0x30   :  { %p2243_p8 = por %p2242_p7, %p2241_p6 }
  0x32   :  { %p2244_p9 = pnand %p2243_p8, %p2237_p5 }
  0x34   :  { %2247 = shalt.err (!%p2244_p9)
}
  0x35   :  { %91 = dma.hbm_to_vmem [thread:$0]  %s2763_s6, 512, %s86_s10, [#allocation12], %s2370_s17, %s2370_s17, %s2371_s18  }
  0x36   :  { %s2248_s25 = scalar_lea.hbm %s2757_s0, 256 }
  0x37   :  { %p2249_p10 = scmp.ne.s32.totalorder %s2757_s0, %s2248_s25  ;;  %p2252_p11 = scmp.lt.u32.totalorder %s2248_s25, %s2757_s0 }
  0x39   :  { %p2254_p12 = pnand %p2252_p11, %p2249_p10 }
  0x3b   :  { %2257 = shalt.err (!%p2254_p12)
}
  0x3c   :  { %s2258_s28 = scalar_lea.vmem %s2470_s12, 256  ;;  %p2263_p0 = scmp.lt.s32.totalorder %s2470_s12, %s2470_s12 }
  0x3d   :  { %p2259_p13 = scmp.ne.s32.totalorder %s2470_s12, %s2258_s28  ;;  %p2264_p1 = scmp.lt.s32.totalorder %s2258_s28, %s2258_s28 }
  0x3f   :  { %p2265_p2 = por %p2264_p1, %p2263_p0 }
  0x41   :  { %p2266_p3 = pnand %p2265_p2, %p2259_p13 }
  0x43   :  { %2269 = shalt.err (!%p2266_p3)
}
  0x44   :  { %29 = dma.hbm_to_vmem [thread:$0]  %s2757_s0, 256, %s2470_s12, [#allocation3], %s2370_s17, %s2370_s17, %s2371_s18  }
  0x45   :  { %s2374_s10 = smov [#allocation7]   ;;  %s2375_s13 = smov [#allocation10]  }
  0x46   :  { %s47_s11 = sshll.u32 %s2374_s10, 4  ;;  %s73_s14 = sshll.u32 %s2375_s13, 4  ;;  %s48_s11 = int_to_ptr.vmem [resolvable:$true] %s47_s11  ;;  %s2507_s14 = int_to_ptr.vmem [resolvable:$true] %s73_s14 }
  0x47   :  { %s2270_s19 = scalar_lea.hbm %s2759_s2, 256 }
  0x48   :  { %p2271_p4 = scmp.ne.s32.totalorder %s2759_s2, %s2270_s19  ;;  %p2274_p5 = scmp.lt.u32.totalorder %s2270_s19, %s2759_s2 }
  0x4a   :  { %p2276_p6 = pnand %p2274_p5, %p2271_p4 }
  0x4c   :  { %2279 = shalt.err (!%p2276_p6)
}
  0x4d   :  { %s2280_s0 = scalar_lea.vmem %s48_s11, 256  ;;  %p2285_p8 = scmp.lt.s32.totalorder %s48_s11, %s48_s11 }
  0x4e   :  { %p2281_p7 = scmp.ne.s32.totalorder %s48_s11, %s2280_s0  ;;  %p2286_p9 = scmp.lt.s32.totalorder %s2280_s0, %s2280_s0 }
  0x50   :  { %p2287_p10 = por %p2286_p9, %p2285_p8 }
  0x52   :  { %p2288_p11 = pnand %p2287_p10, %p2281_p7 }
  0x54   :  { %2291 = shalt.err (!%p2288_p11)
}
  0x55   :  { %53 = dma.hbm_to_vmem [thread:$0]  %s2759_s2, 256, %s48_s11, [#allocation6], %s2370_s17, %s2370_s17, %s2371_s18  }
  0x56   :  { %s2292_s25 = scalar_lea.hbm %s2762_s5, 512 }
  0x57   :  { %p2293_p12 = scmp.ne.s32.totalorder %s2762_s5, %s2292_s25  ;;  %p2296_p13 = scmp.lt.u32.totalorder %s2292_s25, %s2762_s5 }
  0x59   :  { %p2298_p0 = pnand %p2296_p13, %p2293_p12 }
  0x5b   :  { %2301 = shalt.err (!%p2298_p0)
}
  0x5c   :  { %s2302_s28 = scalar_lea.vmem %s2507_s14, 512  ;;  %p2307_p2 = scmp.lt.s32.totalorder %s2507_s14, %s2507_s14 }
  0x5d   :  { %p2303_p1 = scmp.ne.s32.totalorder %s2507_s14, %s2302_s28  ;;  %p2308_p3 = scmp.lt.s32.totalorder %s2302_s28, %s2302_s28 }
  0x5f   :  { %p2309_p4 = por %p2308_p3, %p2307_p2 }
  0x61   :  { %p2310_p5 = pnand %p2309_p4, %p2303_p1 }
  0x63   :  { %2313 = shalt.err (!%p2310_p5)
}
  0x64   :  { %79 = dma.hbm_to_vmem [thread:$0]  %s2762_s5, 512, %s2507_s14, [#allocation9], %s2370_s17, %s2370_s17, %s2371_s18  }
  0x65   :  { %s2376_s9 = smov [#allocation13]   ;;  %s2314_s15 = scalar_lea.hbm %s2764_s7, 512 }
  0x66   :  { %s97_s10 = sshll.u32 %s2376_s9, 4  ;;  %p2315_p6 = scmp.ne.s32.totalorder %s2764_s7, %s2314_s15  ;;  %s98_s10 = int_to_ptr.vmem [resolvable:$true] %s97_s10 }
  0x67   :  { %p2318_p7 = scmp.lt.u32.totalorder %s2314_s15, %s2764_s7 }
  0x69   :  { %p2320_p8 = pnand %p2318_p7, %p2315_p6 }
  0x6b   :  { %2323 = shalt.err (!%p2320_p8)
}
  0x6c   :  { %s2324_s4 = scalar_lea.vmem %s98_s10, 512  ;;  %p2329_p10 = scmp.lt.s32.totalorder %s98_s10, %s98_s10 }
  0x6d   :  { %p2325_p9 = scmp.ne.s32.totalorder %s98_s10, %s2324_s4  ;;  %p2330_p11 = scmp.lt.s32.totalorder %s2324_s4, %s2324_s4 }
  0x6f   :  { %p2331_p12 = por %p2330_p11, %p2329_p10 }
  0x71   :  { %p2332_p13 = pnand %p2331_p12, %p2325_p9 }
  0x73   :  { %2335 = shalt.err (!%p2332_p13)
}
  0x74   :  { %103 = dma.hbm_to_vmem [thread:$0]  %s2764_s7, 512, %s98_s10, [#allocation12], %s2370_s17, %s2370_s17, %s2371_s18  }
  0x75   :  { %2358 = dma.done.wait [#allocation3], 256  }
  0x76   :  { %2359 = vsyncadd [#allocation3], 4294967040 }
  0x77   :  { %2360 = dma.done.wait [#allocation6], 512  }
  0x78   :  { %2361 = vsyncadd [#allocation6], 4294966784 }
  0x79   :  { %2362 = dma.done.wait [#allocation9], 1024  }
  0x7a   :  { %2363 = vsyncadd [#allocation9], 4294966272 }
  0x7b   :  { %2364 = dma.done.wait [#allocation12], 1024  }
  0x7c   :  { %2365 = vsyncadd [#allocation12], 4294966272  ;;  %v131_v0 = vld [vmem:[#allocation8] sm:$0xff]  ;;  %v132_v1 = vld [vmem:[#allocation8 + $0x8] sm:$0xff]  ;;  %vm135_vm0 = vcmask 261120   ;;  %v2377_v16 = vmov 0.0   ;;  %v390_v17 = vlaneseq }
  0x7d   :  { %v219_v2 = vld [vmem:[#allocation10] sm:$0xff]  ;;  %v2097_v3 = vpack.c.bf16 %v132_v1, %v131_v0  ;;  %v220_v4 = vld [vmem:[#allocation10 + $0x8] sm:$0xff]  ;;  %v133_v5 = vld [vmem:[#allocation8 + $0x10] sm:$0xff]  ;;  %vm2378_vm1 = vmmov 0   ;;  %v2379_v18 = vmov 0   ;;  %vm432_vm2 = vcmask 64512  }
  0x7e   :  { %v134_v6 = vld [vmem:[#allocation8 + $0x18] sm:$0xff]  ;;  %v2105_v7 = vpack.c.bf16 %v220_v4, %v219_v2  ;;  %v221_v9 = vld [vmem:[#allocation10 + $0x10] sm:$0xff]  ;;  %v127_v13 = vld [vmem:[#allocation5] sm:$0xff]  ;;  %2149 = vset.pattern.permute.xlu0 %v2379_v18  ;;  %v2380_v19 = vmov 1966171168   ;;  %v404_v21 = vshrl.u32 %v390_v17, 7 }
  0x7f   :  { %v2101_v8 = vpack.c.bf16 %v134_v6, %v133_v5  ;;  %v222_v10 = vld [vmem:[#allocation10 + $0x18] sm:$0xff]  ;;  %v125_v11 = vld [vmem:[#allocation2] sm:$0xff]  ;;  %2098 = vmatprep.subr.bf16.mxu0 %v2097_v3  ;;  %1992 = vmatprep.mubr.msk.f32.mxu1 %vm135_vm0, %v127_v13  ;;  %v128_v15 = vld [vmem:[#allocation5 + $0x8] sm:$0xff]  ;;  %v401_v20 = vunpack.c.l.s4 %v2380_v19  ;;  %v391_v45 = vand.u32 127, %v390_v17  ;;  %v2381_v47 = vmov -1e+30  }
  0x80   :  { %v2109_v12 = vpack.c.bf16 %v222_v10, %v221_v9  ;;  %1981 = vmatprep.mubr.msk.f32.mxu0 %vm135_vm0, %v125_v11  ;;  %2106 = vmatprep.subr.bf16.mxu1 %v2105_v7  ;;  %v126_v14 = vld [vmem:[#allocation2 + $0x8] sm:$0xff]  ;;  %v1890_v22 = vld.sshfl [vmem:[%s2760_s3] sm:$0x11 pattern:$0x75316420]  ;;  %v416_v26 = vsub.s32 0, %v404_v21 }
  0x81   :  { %2100 = vmatpush3.bf16.msra.mxu0 %v2097_v3  ;;  %2108 = vmatpush3.bf16.msra.mxu1 %v2105_v7  ;;  %v402_v23 = vunpack.c.0.s8 %v401_v20  ;;  %v399_v24 = vcombine.high %v1890_v22, %v1890_v22  ;;  %v304_v37 = vld [vmem:[#allocation11] sm:$0xff]  ;;  %v305_v38 = vld [vmem:[#allocation11 + $0x8] sm:$0xff]  ;;  %v306_v39 = vld [vmem:[#allocation11 + $0x10] sm:$0xff]  ;;  %s2382_s3 = smov 120   ;;  %s2383_s0 = smov 112   ;;  %vm1774_vm5 = vcmask 195584  }
  0x82   :  { %2102 = vmatprep.subr.bf16.mxu0 %v2101_v8  ;;  %2110 = vmatprep.subr.bf16.mxu1 %v2109_v12  ;;  %v2113_v40 = vpack.c.bf16 %v305_v38, %v304_v37  ;;  %v307_v41 = vld [vmem:[#allocation11 + $0x18] sm:$0xff]  ;;  %v129_v42 = vld [vmem:[#allocation7] sm:$0xff]  ;;  %s2384_s12 = smov 104   ;;  %s2385_s22 = smov 16   ;;  %vm1771_vm6 = vcmask 130048  }
  0x83   :  { %v405_v25 = vsub.s32 %v402_v23, %v404_v21  ;;  %v2117_v43 = vpack.c.bf16 %v307_v41, %v306_v39  ;;  %v130_v44 = vld [vmem:[#allocation7 + $0x8] sm:$0xff]  ;;  %s2386_s23 = smov 24   ;;  %s2387_s24 = smov [#allocation14]  }
  0x84   :  { %s1869_s25 = sshll.u32 %s2387_s24, 4  ;;  %s1870_s25 = int_to_ptr.vmem [resolvable:$true] %s1869_s25 }
  0x85   :  { %2104 = vmatpush3.bf16.msra.mxu0 %v2101_v8  ;;  %2112 = vmatpush3.bf16.msra.mxu1 %v2109_v12  ;;  %v406_v27 = vrot.slane %v1890_v22, %v405_v25  ;;  %v413_v28 = vrot.slane %v399_v24, %v405_v25  ;;  %s2336_s26 = scalar_lea.vmem %s1870_s25, 256  ;;  %p2341_p1 = scmp.lt.s32.totalorder %s1870_s25, %s1870_s25 }
  0x86   :  { %2006 = vmatprep.subr.mxu1 %v2377_v16  ;;  %2114 = vmatprep.subr.bf16.mxu0 %v2113_v40  ;;  %p2337_p0 = scmp.ne.s32.totalorder %s1870_s25, %s2336_s26  ;;  %p2342_p2 = scmp.lt.s32.totalorder %s2336_s26, %s2336_s26 }
  0x87   :  { %v417_v29 = vrot.slane %v406_v27, %v416_v26  ;;  %v421_v30 = vrot.slane %v413_v28, %v416_v26 }
  0x88   :  { %1982 = vmatmul.mubr.msk.f32.vlgmr.msra.gmra.mrb[0].mxu0 %vm135_vm0, %v126_v14  ;;  %1993 = vmatmul.mubr.msk.f32.vlgmr.msra.gmra.mrb[0].mxu1 %vm135_vm0, %v128_v15  ;;  %p2343_p3 = por %p2342_p2, %p2341_p1 }
  0x89   :  { %2008 = vmatprep.mubr.msk.f32.mxu1 %vm2378_vm1, %v2377_v16  ;;  %423 = vperm.xlu0 %2149, %v417_v29  }
  0x8a   :  { %2003 = vmatprep.mubr.msk.f32.mxu0 %vm135_vm0, %v129_v42  ;;  %2116 = vmatpush3.bf16.msra.mxu0 %v2113_v40  ;;  %p2344_p4 = pnand %p2343_p3, %p2337_p0 }
  0x8b   :  { %2118 = vmatprep.subr.bf16.mxu0 %v2117_v43 }
  0x8d   :  { %426 = vperm.xlu0 %2149, %v421_v30  }
  0x8e   :  { %2120 = vmatpush3.bf16.msra.mxu0 %v2117_v43 }
  0x8f   :  { %2026 = vmatprep.subr.mxu0 %v2377_v16 }
  0x91   :  { %2004 = vmatmul.mubr.msk.f32.vlgmr.msra.gmra.mrb[2].mxu0 %vm135_vm0, %v130_v44 }
  0x92   :  { %2028 = vmatprep.mubr.msk.f32.mxu0 %vm2378_vm1, %v2377_v16 }
 0x108   :  { %v424_v46 = vpop.permute.xlu0 %423 }
 0x109   :  { %vm428_vm3 = vcmp.lt.s32.totalorder %v391_v45, %v424_v46 }
 0x10a   :  { %v2596_v48 = vsel %vm428_vm3, 0.0, %v2381_v47 }
 0x10c   :  { %v427_v49 = vpop.permute.xlu0 %426 }
 0x10d   :  { %vm429_vm4 = vcmp.lt.s32.totalorder %v391_v45, %v427_v49 }
 0x10e   :  { %v2600_v54 = vsel %vm429_vm4, 0.0, %v2381_v47 }
 0x15b   :  { %v1983_v31 = vpop.f32.mrb[0].mxu0  ;;  %v2569_v32 = vpop.f32.mrb[0].mxu1 }
 0x15c   :  { %v208_v33 = vpop.f32.mrb[1].mxu0  ;;  %v2573_v35 = vpop.f32.mrb[1].mxu1  ;;  %v2584_v36 = vmul.f32 0.35355338, %v1983_v31 }
 0x15d   :  { %v2571_v34 = vmul.f32 0.35355338, %v208_v33  ;;  %2007 = vmatpush3.xpose.msk.msra.mxu1 %vm432_vm2, %v2573_v35 }
 0x15e   :  { %2011 = vmatprep.subr.mxu1 %v2377_v16 }
 0x160   :  { %2009 = vmatmul.mubr.msk.f32.vlgmr.msra.gmra.mrb[2].mxu1 %vm432_vm2, %v2571_v34 }
 0x161   :  { %2012 = vmatpush3.xpose.msk.msra.mxu1 %vm432_vm2, %v2569_v32  ;;  %2013 = vmatprep.mubr.msk.f32.mxu1 %vm2378_vm1, %v2377_v16 }
 0x162   :  { %2016 = vmatprep.subr.mxu1 %v2377_v16 }
 0x164   :  { %2014 = vmatmul.mubr.msk.f32.vlgmr.msra.gmra.mrb[4].mxu1 %vm432_vm2, %v2584_v36  ;;  %v2619_v8 = vpop.f32.mrb[2].mxu0 }
 0x165   :  { %2018 = vmatprep.mubr.msk.f32.mxu1 %vm2378_vm1, %v2377_v16  ;;  %v2621_v9 = vpop.f32.mrb[3].mxu0 }
 0x166   :  { %2017 = vmatpush3.msra.mxu1 %v2621_v9 }
 0x167   :  { %2021 = vmatprep.subr.mxu1 %v2377_v16 }
 0x233   :  { %v505_v50 = vpop.f32.mrb[2].mxu1 }
 0x234   :  { %v506_v51 = vadd.f32 %v505_v50, %v2596_v48  ;;  %v2010_v52 = vpop.f32.mrb[3].mxu1 }
 0x236   :  { %v585_v53 = vsel %vm432_vm2, %v506_v51, -inf }
 0x237   :  { %586 = vmax.xlane.f32.xlu1 %v585_v53  ;;  %v581_v55 = vpop.f32.mrb[4].mxu1 }
 0x238   :  { %v582_v56 = vadd.f32 %v581_v55, %v2600_v54  ;;  %v2015_v57 = vpop.f32.mrb[5].mxu1 }
 0x23a   :  { %v588_v58 = vsel %vm432_vm2, %v582_v56, -inf }
 0x23b   :  { %589 = vmax.xlane.f32.xlu1 %v588_v58 }
 0x24c   :  { %755 = vrot.lane.b32.xlu1 %v2573_v35, %s2382_s3 }
 0x250   :  { %833 = vrot.lane.b32.xlu1 %v2569_v32, %s2382_s3 }
 0x254   :  { %753 = vrot.lane.b32.xlu1 %v2571_v34, %s2382_s3 }
 0x2c4   :  { %v587_v59 = vpop.xlane.xlu1 %586 }
 0x2c5   :  { %v591_v60 = vsub.f32 %v506_v51, %v587_v59 }
 0x2c7   :  { %v593_v61 = vmul.f32 1.442695, %v591_v60 }
 0x2c8   :  { %v590_v62 = vpop.xlane.xlu1 %589 }
 0x2c9   :  { %2150 = vpow2.f32 %v593_v61  ;;  %v592_v63 = vsub.f32 %v582_v56, %v590_v62 }
 0x2cb   :  { %v595_v0 = vmul.f32 1.442695, %v592_v63 }
 0x2cc   :  { %v756_v1 = vpop.permute.xlu1 %755 }
 0x2cd   :  { %2152 = vpow2.f32 %v595_v0  ;;  %2027 = vmatpush3.xpose.msk.msra.mxu0 %vm432_vm2, %v756_v1 }
 0x2ce   :  { %2036 = vmatprep.subr.mxu0 %v2377_v16 }
 0x2d0   :  { %v834_v2 = vpop.permute.xlu1 %833 }
 0x2d3   :  { %v2151_v3 = vpop.eup %2150 }
 0x2d4   :  { %v754_v4 = vpop.permute.xlu1 %753  ;;  %v597_v5 = vsel %vm432_vm2, %v2151_v3, 0.0 }
 0x2d5   :  { %598 = vadd.xlane.f32.xlu0 %v597_v5  ;;  %2029 = vmatmul.mubr.msk.f32.vlgmr.msra.gmra.mrb[4].mxu0 %vm432_vm2, %v754_v4 }
 0x2d6   :  { %2038 = vmatprep.mubr.msk.f32.mxu0 %vm2378_vm1, %v2377_v16 }
 0x2d7   :  { %v2153_v6 = vpop.eup %2152 }
 0x2d8   :  { %v600_v7 = vsel %vm432_vm2, %v2153_v6, 0.0 }
 0x2d9   :  { %601 = vadd.xlane.f32.xlu1 %v600_v7 }
 0x2ea   :  { %831 = vrot.lane.b32.xlu1 %v2584_v36, %s2382_s3 }
 0x362   :  { %v599_v10 = vpop.xlane.xlu0 %598 }
 0x363   :  { %2154 = vrcp.f32 %v599_v10 }
 0x366   :  { %v602_v11 = vpop.xlane.xlu1 %601 }
 0x367   :  { %2156 = vrcp.f32 %v602_v11 }
 0x36a   :  { %v832_v17 = vpop.permute.xlu1 %831 }
 0x36d   :  { %v2155_v12 = vpop.eup %2154 }
 0x36e   :  { %v605_v13 = vmul.f32 %v2155_v12, %v2151_v3 }
 0x370   :  { %2019 = vmatmul.mubr.msk.f32.vlgmr.msra.gmra.mrb[6].mxu1 %vm432_vm2, %v605_v13 }
 0x371   :  { %v2157_v14 = vpop.eup %2156  ;;  %2022 = vmatpush3.msra.mxu1 %v2619_v8  ;;  %2023 = vmatprep.mubr.msk.f32.mxu1 %vm2378_vm1, %v2377_v16 }
 0x372   :  { %v606_v15 = vmul.f32 %v2157_v14, %v2153_v6  ;;  %2031 = vmatprep.subr.mxu1 %v2377_v16 }
 0x374   :  { %2024 = vmatmul.mubr.msk.f32.vlgmr.msra.gmra.mrb[8].mxu1 %vm432_vm2, %v606_v15 }
 0x375   :  { %2033 = vmatprep.mubr.msk.f32.mxu1 %vm2378_vm1, %v2377_v16 }
 0x378   :  { %2032 = vmatpush3.xpose.msk.msra.mxu1 %vm432_vm2, %v834_v2 }
 0x379   :  { %2041 = vmatprep.subr.mxu1 %v2377_v16 }
 0x37b   :  { %2034 = vmatmul.mubr.msk.f32.vlgmr.msra.gmra.mrb[10].mxu1 %vm432_vm2, %v832_v17 }
 0x37c   :  { %2043 = vmatprep.mubr.msk.f32.mxu1 %vm2378_vm1, %v2377_v16 }
 0x3a8   :  { %v827_v18 = vpop.f32.mrb[4].mxu0 }
 0x3a9   :  { %v828_v19 = vadd.f32 %v827_v18, %v2596_v48  ;;  %v2030_v20 = vpop.f32.mrb[5].mxu0 }
 0x3ab   :  { %v909_v21 = vsel %vm432_vm2, %v828_v19, -inf }
 0x3ac   :  { %910 = vmax.xlane.f32.xlu0 %v909_v21 }
 0x439   :  { %v911_v22 = vpop.xlane.xlu0 %910 }
 0x43a   :  { %v915_v23 = vsub.f32 %v828_v19, %v911_v22 }
 0x43c   :  { %v917_v24 = vmul.f32 1.442695, %v915_v23 }
 0x43e   :  { %2158 = vpow2.f32 %v917_v24 }
 0x443   :  { %v2640_v25 = vpop.f32.mrb[6].mxu1 }
 0x444   :  { %v2020_v26 = vpop.f32.mrb[7].mxu1 }
 0x447   :  { %v2642_v27 = vpop.f32.mrb[8].mxu1 }
 0x448   :  { %v2159_v28 = vpop.eup %2158  ;;  %v2025_v29 = vpop.f32.mrb[9].mxu1 }
 0x449   :  { %v921_v30 = vsel %vm432_vm2, %v2159_v28, 0.0 }
 0x44a   :  { %922 = vadd.xlane.f32.xlu0 %v921_v30 }
 0x44e   :  { %v905_v31 = vpop.f32.mrb[10].mxu1 }
 0x44f   :  { %v906_v33 = vadd.f32 %v905_v31, %v2600_v54  ;;  %v2035_v37 = vpop.f32.mrb[11].mxu1 }
 0x451   :  { %v912_v38 = vsel %vm432_vm2, %v906_v33, -inf }
 0x452   :  { %913 = vmax.xlane.f32.xlu1 %v912_v38 }
 0x460   :  { %932 = vrot.lane.b32.xlu0 %v2621_v9, %s2382_s3 }
 0x463   :  { %1165 = vrot.lane.b32.xlu1 %v2569_v32, %s2383_s0 }
 0x464   :  { %1009 = vrot.lane.b32.xlu0 %v2619_v8, %s2382_s3 }
 0x468   :  { %1087 = vrot.lane.b32.xlu0 %v2573_v35, %s2383_s0 }
 0x46c   :  { %1085 = vrot.lane.b32.xlu0 %v2571_v34, %s2383_s0 }
 0x4d7   :  { %v923_v39 = vpop.xlane.xlu0 %922 }
 0x4d8   :  { %2160 = vrcp.f32 %v923_v39 }
 0x4db   :  { %v933_v40 = vpop.permute.xlu0 %932 }
 0x4dc   :  { %2037 = vmatpush3.msra.mxu0 %v933_v40 }
 0x4dd   :  { %2046 = vmatprep.subr.mxu0 %v2377_v16 }
 0x4df   :  { %v914_v41 = vpop.xlane.xlu1 %913  ;;  %v1010_v42 = vpop.permute.xlu0 %1009 }
 0x4e0   :  { %v916_v43 = vsub.f32 %v906_v33, %v914_v41  ;;  %2042 = vmatpush3.msra.mxu1 %v1010_v42 }
 0x4e1   :  { %2051 = vmatprep.subr.mxu1 %v2377_v16 }
 0x4e2   :  { %v2161_v44 = vpop.eup %2160  ;;  %v919_v45 = vmul.f32 1.442695, %v916_v43 }
 0x4e3   :  { %v929_v46 = vmul.f32 %v2161_v44, %v2159_v28  ;;  %v1088_v47 = vpop.permute.xlu0 %1087  ;;  %v1166_v56 = vpop.permute.xlu1 %1165 }
 0x4e4   :  { %2162 = vpow2.f32 %v919_v45 }
 0x4e5   :  { %2039 = vmatmul.mubr.msk.f32.vlgmr.msra.gmra.mrb[6].mxu0 %vm432_vm2, %v929_v46 }
 0x4e6   :  { %2047 = vmatpush3.xpose.msk.msra.mxu0 %vm432_vm2, %v1088_v47  ;;  %2048 = vmatprep.mubr.msk.f32.mxu0 %vm2378_vm1, %v2377_v16 }
 0x4e7   :  { %v1086_v49 = vpop.permute.xlu0 %1085  ;;  %2056 = vmatprep.subr.mxu0 %v2377_v16 }
 0x4e9   :  { %2049 = vmatmul.mubr.msk.f32.vlgmr.msra.gmra.mrb[8].mxu0 %vm432_vm2, %v1086_v49 }
 0x4ea   :  { %2058 = vmatprep.mubr.msk.f32.mxu0 %vm2378_vm1, %v2377_v16 }
 0x4ee   :  { %v2163_v50 = vpop.eup %2162 }
 0x4ef   :  { %v924_v51 = vsel %vm432_vm2, %v2163_v50, 0.0 }
 0x4f0   :  { %925 = vadd.xlane.f32.xlu0 %v924_v51 }
 0x506   :  { %1163 = vrot.lane.b32.xlu0 %v2584_v36, %s2383_s0 }
 0x57d   :  { %v926_v52 = vpop.xlane.xlu0 %925 }
 0x57e   :  { %2164 = vrcp.f32 %v926_v52 }
 0x581   :  { %v1164_v57 = vpop.permute.xlu0 %1163 }
 0x588   :  { %v2165_v53 = vpop.eup %2164 }
 0x589   :  { %v930_v55 = vmul.f32 %v2165_v53, %v2163_v50 }
 0x58b   :  { %2044 = vmatmul.mubr.msk.f32.vlgmr.msra.gmra.mrb[12].mxu1 %vm432_vm2, %v930_v55 }
 0x58c   :  { %2052 = vmatpush3.xpose.msk.msra.mxu1 %vm432_vm2, %v1166_v56  ;;  %2053 = vmatprep.mubr.msk.f32.mxu1 %vm2378_vm1, %v2377_v16 }
 0x58d   :  { %2061 = vmatprep.subr.mxu1 %v2377_v16 }
 0x58f   :  { %2054 = vmatmul.mubr.msk.f32.vlgmr.msra.gmra.mrb[14].mxu1 %vm432_vm2, %v1164_v57 }
 0x590   :  { %2063 = vmatprep.mubr.msk.f32.mxu1 %vm2378_vm1, %v2377_v16 }
 0x5b8   :  { %v2678_v58 = vpop.f32.mrb[6].mxu0 }
 0x5b9   :  { %v2040_v59 = vpop.f32.mrb[7].mxu0 }
 0x5bc   :  { %v1159_v60 = vpop.f32.mrb[8].mxu0 }
 0x5bd   :  { %v1160_v61 = vadd.f32 %v1159_v60, %v2596_v48  ;;  %v2050_v62 = vpop.f32.mrb[9].mxu0 }
 0x5bf   :  { %v1241_v63 = vsel %vm432_vm2, %v1160_v61, -inf }
 0x5c0   :  { %1242 = vmax.xlane.f32.xlu0 %v1241_v63 }
 0x64d   :  { %v1243_v0 = vpop.xlane.xlu0 %1242 }
 0x64e   :  { %v1247_v1 = vsub.f32 %v1160_v61, %v1243_v0  ;;  %v1777_v0 = vld [vmem:[#allocation13] sm:$0xff] }
 0x650   :  { %v1249_v2 = vmul.f32 1.442695, %v1247_v1  ;;  %v1778_v1 = vld [vmem:[#allocation13 + $0x8] sm:$0xff] }
 0x652   :  { %2166 = vpow2.f32 %v1249_v2  ;;  %v1779_v2 = vld [vmem:[#allocation13 + $0x10] sm:$0xff] }
 0x65c   :  { %v2167_v3 = vpop.eup %2166 }
 0x65d   :  { %v1253_v4 = vsel %vm432_vm2, %v2167_v3, 0.0 }
 0x65e   :  { %v2683_v5 = vpop.f32.mrb[12].mxu1  ;;  %1254 = vadd.xlane.f32.xlu0 %v1253_v4 }
 0x65f   :  { %v2045_v6 = vpop.f32.mrb[13].mxu1 }
 0x662   :  { %v1237_v7 = vpop.f32.mrb[14].mxu1 }
 0x663   :  { %v1238_v10 = vadd.f32 %v1237_v7, %v2600_v54  ;;  %v2055_v11 = vpop.f32.mrb[15].mxu1 }
 0x665   :  { %v1244_v12 = vsel %vm432_vm2, %v1238_v10, -inf }
 0x666   :  { %1245 = vmax.xlane.f32.xlu1 %v1244_v12 }
 0x674   :  { %1263 = vrot.lane.b32.xlu0 %v2621_v9, %s2383_s0 }
 0x677   :  { %1339 = vrot.lane.b32.xlu1 %v2619_v8, %s2383_s0 }
 0x678   :  { %1495 = vrot.lane.b32.xlu0 %v2569_v32, %s2384_s12 }
 0x67b   :  { %1417 = vrot.lane.b32.xlu1 %v2573_v35, %s2384_s12 }
 0x67f   :  { %1415 = vrot.lane.b32.xlu1 %v2571_v34, %s2384_s12 }
 0x6eb   :  { %v1255_v13 = vpop.xlane.xlu0 %1254 }
 0x6ec   :  { %2168 = vrcp.f32 %v1255_v13 }
 0x6ef   :  { %v1264_v14 = vpop.permute.xlu0 %1263 }
 0x6f0   :  { %2057 = vmatpush3.msra.mxu0 %v1264_v14 }
 0x6f1   :  { %2066 = vmatprep.subr.mxu0 %v2377_v16 }
 0x6f3   :  { %v1246_v15 = vpop.xlane.xlu1 %1245  ;;  %v1496_v23 = vpop.permute.xlu0 %1495 }
 0x6f4   :  { %v1248_v17 = vsub.f32 %v1238_v10, %v1246_v15 }
 0x6f6   :  { %v2169_v18 = vpop.eup %2168  ;;  %v1251_v19 = vmul.f32 1.442695, %v1248_v17 }
 0x6f7   :  { %v1261_v20 = vmul.f32 %v2169_v18, %v2167_v3  ;;  %v1340_v21 = vpop.permute.xlu1 %1339  ;;  %v1780_v3 = vld [vmem:[#allocation13 + $0x18] sm:$0xff] }
 0x6f8   :  { %2170 = vpow2.f32 %v1251_v19  ;;  %2062 = vmatpush3.msra.mxu1 %v1340_v21  ;;  %v2125_v4 = vpack.c.bf16 %v1780_v3, %v1779_v2 }
 0x6f9   :  { %2059 = vmatmul.mubr.msk.f32.vlgmr.msra.gmra.mrb[10].mxu0 %vm432_vm2, %v1261_v20  ;;  %2071 = vmatprep.subr.mxu1 %v2377_v16 }
 0x6fa   :  { %2068 = vmatprep.mubr.msk.f32.mxu0 %vm2378_vm1, %v2377_v16 }
 0x6fb   :  { %v1418_v32 = vpop.permute.xlu1 %1417 }
 0x6fc   :  { %2067 = vmatpush3.xpose.msk.msra.mxu0 %vm432_vm2, %v1418_v32 }
 0x6fd   :  { %2076 = vmatprep.subr.mxu0 %v2377_v16 }
 0x6ff   :  { %v1416_v34 = vpop.permute.xlu1 %1415 }
 0x700   :  { %2069 = vmatmul.mubr.msk.f32.vlgmr.msra.gmra.mrb[12].mxu0 %vm432_vm2, %v1416_v34 }
 0x701   :  { %2078 = vmatprep.mubr.msk.f32.mxu0 %vm2378_vm1, %v2377_v16 }
 0x702   :  { %v2171_v35 = vpop.eup %2170 }
 0x703   :  { %v1256_v22 = vsel %vm432_vm2, %v2171_v35, 0.0 }
 0x704   :  { %1257 = vadd.xlane.f32.xlu0 %v1256_v22 }
 0x71a   :  { %1493 = vrot.lane.b32.xlu0 %v2584_v36, %s2384_s12 }
 0x791   :  { %v1258_v24 = vpop.xlane.xlu0 %1257 }
 0x792   :  { %2172 = vrcp.f32 %v1258_v24 }
 0x795   :  { %v1494_v29 = vpop.permute.xlu0 %1493 }
 0x79c   :  { %v2173_v26 = vpop.eup %2172 }
 0x79d   :  { %v1262_v28 = vmul.f32 %v2173_v26, %v2171_v35 }
 0x79f   :  { %2064 = vmatmul.mubr.msk.f32.vlgmr.msra.gmra.mrb[16].mxu1 %vm432_vm2, %v1262_v28 }
 0x7a0   :  { %2072 = vmatpush3.xpose.msk.msra.mxu1 %vm432_vm2, %v1496_v23  ;;  %2073 = vmatprep.mubr.msk.f32.mxu1 %vm2378_vm1, %v2377_v16 }
 0x7a1   :  { %2081 = vmatprep.subr.mxu1 %v2377_v16 }
 0x7a3   :  { %2074 = vmatmul.mubr.msk.f32.vlgmr.msra.gmra.mrb[18].mxu1 %vm432_vm2, %v1494_v29 }
 0x7a4   :  { %2083 = vmatprep.mubr.msk.f32.mxu1 %vm2378_vm1, %v2377_v16 }
 0x7cc   :  { %v1335_v36 = vpop.f32.mrb[10].mxu0 }
 0x7cd   :  { %v2060_v30 = vpop.f32.mrb[11].mxu0 }
 0x7d3   :  { %v1489_v31 = vpop.f32.mrb[12].mxu0 }
 0x7d4   :  { %v1490_v33 = vadd.f32 %v1489_v31, %v2596_v48  ;;  %v2070_v37 = vpop.f32.mrb[13].mxu0 }
 0x7d6   :  { %v1571_v38 = vsel %vm432_vm2, %v1490_v33, -inf }
 0x7d7   :  { %1572 = vmax.xlane.f32.xlu1 %v1571_v38 }
 0x864   :  { %v1573_v39 = vpop.xlane.xlu1 %1572 }
 0x865   :  { %v1577_v40 = vsub.f32 %v1490_v33, %v1573_v39 }
 0x867   :  { %v1579_v41 = vmul.f32 1.442695, %v1577_v40 }
 0x869   :  { %2174 = vpow2.f32 %v1579_v41 }
 0x872   :  { %v1411_v42 = vpop.f32.mrb[16].mxu1 }
 0x873   :  { %v2065_v43 = vpop.f32.mrb[17].mxu1  ;;  %v2175_v47 = vpop.eup %2174 }
 0x874   :  { %v1583_v48 = vsel %vm432_vm2, %v2175_v47, 0.0 }
 0x876   :  { %v1567_v44 = vpop.f32.mrb[18].mxu1 }
 0x877   :  { %v1568_v45 = vadd.f32 %v1567_v44, %v2600_v54  ;;  %v2075_v46 = vpop.f32.mrb[19].mxu1 }
 0x879   :  { %v1574_v16 = vsel %vm432_vm2, %v1568_v45, -inf }
 0x87a   :  { %1575 = vmax.xlane.f32.xlu0 %v1574_v16 }
 0x87e   :  { %1584 = vadd.xlane.f32.xlu0 %v1583_v48 }
 0x894   :  { %1593 = vrot.lane.b32.xlu0 %v2621_v9, %s2384_s12 }
 0x898   :  { %1749 = vrot.lane.b32.xlu0 %v2683_v5, %s2371_s18 }
 0x89c   :  { %1757 = vrot.lane.b32.xlu0 %v1411_v42, %s2385_s22 }
 0x907   :  { %v1576_v49 = vpop.xlane.xlu0 %1575 }
 0x908   :  { %v1578_v50 = vsub.f32 %v1568_v45, %v1576_v49 }
 0x90a   :  { %v1581_v51 = vmul.f32 1.442695, %v1578_v50 }
 0x90b   :  { %v1585_v54 = vpop.xlane.xlu0 %1584 }
 0x90c   :  { %2176 = vpow2.f32 %v1581_v51 }
 0x90d   :  { %2178 = vrcp.f32 %v1585_v54 }
 0x90f   :  { %v1594_v52 = vpop.permute.xlu0 %1593 }
 0x910   :  { %2077 = vmatpush3.msra.mxu0 %v1594_v52 }
 0x913   :  { %v1750_v14 = vpop.permute.xlu0 %1749 }
 0x914   :  { %v1770_v17 = vsel %vm432_vm2, %v2642_v27, %v1750_v14 }
 0x916   :  { %v2177_v53 = vpop.eup %2176 }
 0x917   :  { %v2179_v55 = vpop.eup %2178  ;;  %v1586_v56 = vsel %vm432_vm2, %v2177_v53, 0.0  ;;  %v1758_v15 = vpop.permute.xlu0 %1757 }
 0x918   :  { %v1591_v57 = vmul.f32 %v2179_v55, %v2175_v47  ;;  %1587 = vadd.xlane.f32.xlu1 %v1586_v56  ;;  %v1773_v18 = vsel %vm1771_vm6, %v1770_v17, %v1758_v15 }
 0x91a   :  { %2079 = vmatmul.mubr.msk.f32.vlgmr.msra.gmra.mrb[14].mxu0 %vm432_vm2, %v1591_v57 }
 0x929   :  { %1669 = vrot.lane.b32.xlu1 %v2619_v8, %s2384_s12  ;;  %v2121_v8 = vpack.c.bf16 %v1778_v1, %v1777_v0 }
 0x92b   :  { %2122 = vmatprep.subr.bf16.mxu0 %v2121_v8 }
 0x92c   :  { %2124 = vmatpush3.bf16.msra.mxu0 %v2121_v8 }
 0x92d   :  { %1747 = vrot.lane.b32.xlu1 %v2678_v58, %s2371_s18  ;;  %2126 = vmatprep.subr.bf16.mxu0 %v2125_v4 }
 0x930   :  { %2128 = vmatpush3.bf16.msra.mxu0 %v2125_v4 }
 0x931   :  { %1755 = vrot.lane.b32.xlu1 %v1335_v36, %s2385_s22 }
 0x9a5   :  { %v1588_v9 = vpop.xlane.xlu1 %1587 }
 0x9a6   :  { %2180 = vrcp.f32 %v1588_v9 }
 0x9a9   :  { %v1670_v59 = vpop.permute.xlu1 %1669 }
 0x9aa   :  { %2082 = vmatpush3.msra.mxu1 %v1670_v59 }
 0x9ad   :  { %v1748_v58 = vpop.permute.xlu1 %1747 }
 0x9ae   :  { %v1769_v6 = vsel %vm432_vm2, %v2640_v25, %v1748_v58 }
 0x9b0   :  { %v2181_v60 = vpop.eup %2180 }
 0x9b1   :  { %v1592_v61 = vmul.f32 %v2181_v60, %v2177_v53  ;;  %v1756_v5 = vpop.permute.xlu1 %1755 }
 0x9b2   :  { %v1772_v7 = vsel %vm1771_vm6, %v1769_v6, %v1756_v5 }
 0x9b3   :  { %2084 = vmatmul.mubr.msk.f32.vlgmr.msra.gmra.mrb[20].mxu1 %vm432_vm2, %v1592_v61 }
 0x9ed   :  { %v1665_v62 = vpop.f32.mrb[14].mxu0 }
 0x9ee   :  { %1763 = vrot.lane.b32.xlu1 %v1665_v62, %s2386_s23  ;;  %v2080_v63 = vpop.f32.mrb[15].mxu0 }
 0xa60   :  { %v1764_v10 = vpop.permute.xlu1 %1763 }
 0xa61   :  { %v1775_v11 = vsel %vm1774_vm5, %v1772_v7, %v1764_v10 }
 0xa62   :  { %2094 = vmatprep.mubr.msk.f32.mxu0 %vm135_vm0, %v1775_v11 }
 0xa86   :  { %v1741_v12 = vpop.f32.mrb[20].mxu1 }
 0xa87   :  { %1765 = vrot.lane.b32.xlu0 %v1741_v12, %s2386_s23  ;;  %v2085_v13 = vpop.f32.mrb[21].mxu1 }
 0xaf9   :  { %v1766_v19 = vpop.permute.xlu0 %1765 }
 0xafa   :  { %v1776_v20 = vsel %vm1774_vm5, %v1773_v18, %v1766_v19 }
 0xafb   :  { %2095 = vmatmul.mubr.msk.f32.vlgmr.msra.gmra.mrb[16].mxu0 %vm135_vm0, %v1776_v20 }
 0xbce   :  { %v2096_v25 = vpop.f32.mrb[16].mxu0 }
 0xbcf   :  { %1863 = vst.msk [vmem:[#allocation14 + $0x8] sm:$0xff] %vm135_vm0, %v2096_v25  ;;  %v1853_v21 = vpop.f32.mrb[17].mxu0 }
 0xbd0   :  { %1862 = vst.msk [vmem:[#allocation14] sm:$0xff] %vm135_vm0, %v1853_v21 }
 0xbd1   :  { %2347 = shalt.err (!%p2344_p4)
}
 0xbd2   :  { %s2348_s1 = scalar_lea.hbm %s2765_s8, 256 }
 0xbd3   :  { %p2349_p5 = scmp.ne.s32.totalorder %s2765_s8, %s2348_s1  ;;  %p2352_p6 = scmp.lt.u32.totalorder %s2348_s1, %s2765_s8 }
 0xbd5   :  { %p2354_p7 = pnand %p2352_p6, %p2349_p5 }
 0xbd7   :  { %2357 = shalt.err (!%p2354_p7)
}
 0xbd8   :  { %1875 = dma.vmem_to_hbm [thread:$0]  %s1870_s25, 256, %s2765_s8, [#allocation4], %s2370_s17, %s2370_s17, %s2371_s18  }
 0xbd9   :  { %2366 = dma.done.wait [#allocation4], 256  }
 0xbda   :  { %2367 = vsyncadd [#allocation4], 4294967040 }
 0xbdb   :  { %1879 = vsyncpa [#allocation3], 1 }
 0xbdc   :  { %1880 = vsyncpa [#allocation6], 1 }
 0xbdd   :  { %1881 = vsyncpa [#allocation9], 1 }
 0xbde   :  { %1882 = vsyncpa [#allocation12], 1 }
 0xbdf   :  { %1883 = vsyncpa [#allocation4], 1 }

</bundles_post_ra>
